<compile_context>
chip_gen: v6e
topology: v6e:2x2x1
jax: 0.10.0
libtpu: 0.0.40
codegen_flags: <defaults>
</compile_context>

<pallas_src>
import math

import jax
import jax.numpy as jnp
from jax.experimental import pallas as pl
from jax.experimental.pallas import tpu as pltpu

# ---- model hyperparameters (small, consistent with the module) ----
B = 2           # batch
S = 8           # sequence length
E = 32          # embed_size
H = 4           # heads
DH = E // H     # head dim
F = 64          # ff_hidden_size
LN_EPS = 1e-5

BS = B * S
VECW = max(E, F)     # width of the packed bias / LayerNorm vector slab


def _layernorm(x, gamma, beta):
    # x: (S, E); gamma/beta: (1, E)
    mu = jnp.mean(x, axis=-1, keepdims=True)
    xc = x - mu
    var = jnp.mean(xc * xc, axis=-1, keepdims=True)
    return xc * jax.lax.rsqrt(var + LN_EPS) * gamma + beta


def transformer_block_kernel(x_ref, wq_ref, wk_ref, wv_ref, wo_ref, w1_ref, w2_ref,
                             vec_ref, hm_ref, o_ref):
    """One grid step = one batch element.

    x_ref          : (S, E)        activation rows of this batch element
    wq/wk/wv_ref   : (E, E)        separate lane-aligned projections (1/sqrt(DH) folded into wq)
    wo_ref         : (E, E)        output projection
    w1_ref, w2_ref : (E, F), (F, E) feed-forward
    vec_ref        : (10, VECW)    rows = [b_q b_k b_v b_out b1 b2 g1 be1 g2 be2] (zero-padded)
    hm_ref         : (H, S, E)     per-head lane mask (1.0 on that head's DH columns)
    o_ref          : (S, E)
    """
    f32 = jnp.float32
    x = x_ref[...]
    vec = vec_ref[...]
    b_q, b_k, b_v = vec[0:1, :E], vec[1:2, :E], vec[2:3, :E]
    b_o, b_1, b_2 = vec[3:4, :E], vec[4:5, :F], vec[5:6, :E]
    g1, be1 = vec[6:7, :E], vec[7:8, :E]
    g2, be2 = vec[8:9, :E], vec[9:10, :E]

    # ---- QKV projections: three aligned matmuls (no fused-slab column slicing) ----
    q = jnp.dot(x, wq_ref[...], preferred_element_type=f32) + b_q   # already scaled by 1/sqrt(DH)
    k = jnp.dot(x, wk_ref[...], preferred_element_type=f32) + b_k
    v = jnp.dot(x, wv_ref[...], preferred_element_type=f32) + b_v

    hm = hm_ref[...]                                                 # (H, S, E)

    # ---- head split via VPU masking (no lane slice / stack / concat relayouts) ----
    # qm[(h,i), e] = mask[h,e] * q[i,e]; contracting the FULL E dim against K gives
    # exact per-head scores because off-head columns are zeroed.
    qm = (hm * q).reshape(H * S, E)                                  # (H*S, E)
    scores = jax.lax.dot_general(qm, k, (((1,), (1,)), ((), ())),    # Q @ K^T, per head
                                 preferred_element_type=f32)         # (H*S, S)

    # ---- flat 2-D softmax chain (single pass; approx reciprocal -> EUP slot) ----
    m = jnp.max(scores, axis=-1, keepdims=True)
    p = jnp.exp(scores - m)
    p = p * pl.reciprocal(jnp.sum(p, axis=-1, keepdims=True), approx=True)

    # ---- PV + head-merge fused into the output projection ----
    # vw[(h,j), e] = (mask_h * v_j) @ W_out ;  attn = sum_h P_h @ vw_h  (+ b_out)
    vm = (hm * v).reshape(H * S, E)                                  # (H*S, E)
    vw = jnp.dot(vm, wo_ref[...], preferred_element_type=f32)        # (H*S, E)
    ctx = jnp.einsum('hij,hje->hie', p.reshape(H, S, S), vw.reshape(H, S, E),
                     preferred_element_type=f32)                     # (H, S, E)
    attn = jnp.sum(ctx, axis=0) + b_o                                # (S, E)

    # ---- residual + norm1 (dropout = identity) ----
    x1 = _layernorm(x + attn, g1, be1)

    # ---- feed-forward: Linear -> ReLU -> Linear ----
    h1 = jnp.maximum(jnp.dot(x1, w1_ref[...], preferred_element_type=f32) + b_1, 0.0)
    ff = jnp.dot(h1, w2_ref[...], preferred_element_type=f32) + b_2

    # ---- residual + norm2 (dropout = identity) ----
    o_ref[...] = _layernorm(x1 + ff, g2, be2).astype(o_ref.dtype)


def prepare_params(params):
    """One-time packing, hoisted OUT of the per-call path:
    fold 1/sqrt(DH) into the Q projection, split fused QKV into three aligned operands,
    pack the 10 small vectors into one row slab, precompute the per-head lane mask."""
    scale = 1.0 / math.sqrt(DH)
    w_qkv, b_qkv = params["w_qkv"], params["b_qkv"]
    w_q = w_qkv[:, 0:E] * scale
    w_k = w_qkv[:, E:2 * E]
    w_v = w_qkv[:, 2 * E:3 * E]
    b_q = b_qkv[:, 0:E] * scale
    b_k = b_qkv[:, E:2 * E]
    b_v = b_qkv[:, 2 * E:3 * E]

    def row(vec):  # pad a (1, n) vector to the slab width
        return jnp.pad(vec, ((0, 0), (0, VECW - vec.shape[1])))

    vpack = jnp.concatenate(
        [row(b_q), row(b_k), row(b_v), row(params["b_out"]),
         row(params["b1"]), row(params["b2"]),
         row(params["gamma1"]), row(params["beta1"]),
         row(params["gamma2"]), row(params["beta2"])], axis=0)           # (10, VECW)

    head = jnp.arange(H, dtype=jnp.int32)[:, None]
    col = jnp.arange(E, dtype=jnp.int32)[None, :]
    hmask = (col // DH == head).astype(jnp.float32)                      # (H, E)
    hmask = jnp.broadcast_to(hmask[:, None, :], (H, S, E))               # (H, S, E)

    return {"w_q": w_q, "w_k": w_k, "w_v": w_v, "w_out": params["w_out"],
            "w1": params["w1"], "w2": params["w2"],
            "vpack": vpack, "hmask": hmask}


def transformer_block(x, prep):
    """x: (B, S, E) float32; prep: output of prepare_params (computed once, reused)."""
    x2d = x.reshape(BS, E)

    def full(shape):  # whole-array block, same block every grid step (stays resident)
        return pl.BlockSpec(shape, lambda b: (0,) * len(shape))

    out2d = pl.pallas_call(
        transformer_block_kernel,
        out_shape=jax.ShapeDtypeStruct((BS, E), jnp.float32),
        grid=(B,),
        in_specs=[
            pl.BlockSpec((S, E), lambda b: (b, 0)),      # x rows of batch b
            full((E, E)), full((E, E)), full((E, E)),    # w_q, w_k, w_v
            full((E, E)),                                # w_out
            full((E, F)), full((F, E)),                  # w1, w2
            full((10, VECW)),                            # bias / LayerNorm slab
            full((H, S, E)),                             # per-head lane mask
        ],
        out_specs=pl.BlockSpec((S, E), lambda b: (b, 0)),
        compiler_params=pltpu.CompilerParams(dimension_semantics=("parallel",)),
    )(x2d, prep["w_q"], prep["w_k"], prep["w_v"], prep["w_out"],
      prep["w1"], prep["w2"], prep["vpack"], prep["hmask"])
    return out2d.reshape(B, S, E)


def init_params(key):
    ks = jax.random.split(key, 8)
    scale = 0.05
    return {
        # nn.MultiheadAttention in_proj: (3E, E) weight -> stored transposed (E, 3E)
        "w_qkv": scale * jax.random.normal(ks[0], (E, 3 * E), jnp.float32),
        "b_qkv": scale * jax.random.normal(ks[1], (1, 3 * E), jnp.float32),
        # out_proj: (E, E) weight -> transposed
        "w_out": scale * jax.random.normal(ks[2], (E, E), jnp.float32),
        "b_out": scale * jax.random.normal(ks[3], (1, E), jnp.float32),
        # ff: Linear(E, F), Linear(F, E) -> transposed weights
        "w1": scale * jax.random.normal(ks[4], (E, F), jnp.float32),
        "b1": scale * jax.random.normal(ks[5], (1, F), jnp.float32),
        "w2": scale * jax.random.normal(ks[6], (F, E), jnp.float32),
        "b2": scale * jax.random.normal(ks[7], (1, E), jnp.float32),
        # LayerNorm affine params (default init: ones / zeros)
        "gamma1": jnp.ones((1, E), jnp.float32),
        "beta1": jnp.zeros((1, E), jnp.float32),
        "gamma2": jnp.ones((1, E), jnp.float32),
        "beta2": jnp.zeros((1, E), jnp.float32),
    }


def reference_forward(x, p):
    # Pure-JAX reference of the same forward (eval-mode dropout).
    def ln(z, g, b):
        mu = jnp.mean(z, -1, keepdims=True)
        var = jnp.mean((z - mu) ** 2, -1, keepdims=True)
        return (z - mu) / jnp.sqrt(var + LN_EPS) * g + b

    qkv = x @ p["w_qkv"] + p["b_qkv"]
    q, k, v = jnp.split(qkv, 3, axis=-1)

    def heads(t):
        return t.reshape(B, S, H, DH).transpose(0, 2, 1, 3)

    qh, kh, vh = heads(q), heads(k), heads(v)
    sc = jnp.einsum("bhqd,bhkd->bhqk", qh, kh) / math.sqrt(DH)
    pr = jax.nn.softmax(sc, axis=-1)
    a = jnp.einsum("bhqk,bhkd->bhqd", pr, vh).transpose(0, 2, 1, 3).reshape(B, S, E)
    a = a @ p["w_out"] + p["b_out"]
    x1 = ln(x + a, p["gamma1"], p["beta1"])
    ff = jnp.maximum(x1 @ p["w1"] + p["b1"], 0.0) @ p["w2"] + p["b2"]
    return ln(x1 + ff, p["gamma2"], p["beta2"])


if __name__ == "__main__":
    key = jax.random.PRNGKey(0)
    kx, kp = jax.random.split(key)
    x = jax.random.normal(kx, (B, S, E), jnp.float32)
    params = init_params(kp)

    # Pack once (hoisted out of the per-call path), then jit only the kernel call.
    prep = jax.block_until_ready(prepare_params(params))
    fwd = jax.jit(transformer_block)

    out = jax.block_until_ready(fwd(x, prep))
    ref = reference_forward(x, params)
    assert out.shape == (B, S, E)
    # approx reciprocal in the softmax slightly loosens numerics vs. exact divide
    assert jnp.allclose(out, ref, atol=2e-3, rtol=2e-3)
    print("KERNEL_OK")
</pallas_src>

<mosaic_0001>
module attributes {stable_mosaic.version = 11 : i64} {
  func.func @transformer_block_kernel(%arg0: i32, %arg1: memref<8x32xf32, #tpu.memory_space<vmem>>, %arg2: memref<32x32xf32, #tpu.memory_space<vmem>>, %arg3: memref<32x32xf32, #tpu.memory_space<vmem>>, %arg4: memref<32x32xf32, #tpu.memory_space<vmem>>, %arg5: memref<32x32xf32, #tpu.memory_space<vmem>>, %arg6: memref<32x64xf32, #tpu.memory_space<vmem>>, %arg7: memref<64x32xf32, #tpu.memory_space<vmem>>, %arg8: memref<10x64xf32, #tpu.memory_space<vmem>>, %arg9: memref<4x8x32xf32, #tpu.memory_space<vmem>>, %arg10: memref<8x32xf32, #tpu.memory_space<vmem>>) attributes {dimension_semantics = [#tpu.dimension_semantics<parallel>], iteration_bounds = array<i64: 2>, scalar_prefetch = 0 : i64, scratch_operands = 0 : i64, tpu.core_type = #tpu.core_type<tc>, window_params = [{transform_indices = @transform_0, window_bounds = array<i64: 8, 32>}, {pipeline_mode = #tpu.pipeline_mode<synchronous>, transform_indices = @transform_1, window_bounds = array<i64: 32, 32>}, {pipeline_mode = #tpu.pipeline_mode<synchronous>, transform_indices = @transform_2, window_bounds = array<i64: 32, 32>}, {pipeline_mode = #tpu.pipeline_mode<synchronous>, transform_indices = @transform_3, window_bounds = array<i64: 32, 32>}, {pipeline_mode = #tpu.pipeline_mode<synchronous>, transform_indices = @transform_4, window_bounds = array<i64: 32, 32>}, {pipeline_mode = #tpu.pipeline_mode<synchronous>, transform_indices = @transform_5, window_bounds = array<i64: 32, 64>}, {pipeline_mode = #tpu.pipeline_mode<synchronous>, transform_indices = @transform_6, window_bounds = array<i64: 64, 32>}, {pipeline_mode = #tpu.pipeline_mode<synchronous>, transform_indices = @transform_7, window_bounds = array<i64: 10, 64>}, {pipeline_mode = #tpu.pipeline_mode<synchronous>, transform_indices = @transform_8, window_bounds = array<i64: 4, 8, 32>}, {transform_indices = @transform_9, window_bounds = array<i64: 8, 32>}]} {
    %c0 = arith.constant 0 : index
    %c0_0 = arith.constant 0 : index
    %0 = vector.load %arg1[%c0, %c0_0] : memref<8x32xf32, #tpu.memory_space<vmem>>, vector<8x32xf32>
    %c0_1 = arith.constant 0 : index
    %c0_2 = arith.constant 0 : index
    %1 = vector.load %arg8[%c0_1, %c0_2] : memref<10x64xf32, #tpu.memory_space<vmem>>, vector<10x64xf32>
    %2 = vector.extract_strided_slice %1 {offsets = [0, 0], sizes = [1, 32], strides = [1, 1]} : vector<10x64xf32> to vector<1x32xf32>
    %3 = vector.extract_strided_slice %1 {offsets = [1, 0], sizes = [1, 32], strides = [1, 1]} : vector<10x64xf32> to vector<1x32xf32>
    %4 = vector.extract_strided_slice %1 {offsets = [2, 0], sizes = [1, 32], strides = [1, 1]} : vector<10x64xf32> to vector<1x32xf32>
    %5 = vector.extract_strided_slice %1 {offsets = [3, 0], sizes = [1, 32], strides = [1, 1]} : vector<10x64xf32> to vector<1x32xf32>
    %6 = vector.extract_strided_slice %1 {offsets = [4, 0], sizes = [1, 64], strides = [1, 1]} : vector<10x64xf32> to vector<1x64xf32>
    %7 = vector.extract_strided_slice %1 {offsets = [5, 0], sizes = [1, 32], strides = [1, 1]} : vector<10x64xf32> to vector<1x32xf32>
    %8 = vector.extract_strided_slice %1 {offsets = [6, 0], sizes = [1, 32], strides = [1, 1]} : vector<10x64xf32> to vector<1x32xf32>
    %9 = vector.extract_strided_slice %1 {offsets = [7, 0], sizes = [1, 32], strides = [1, 1]} : vector<10x64xf32> to vector<1x32xf32>
    %10 = vector.extract_strided_slice %1 {offsets = [8, 0], sizes = [1, 32], strides = [1, 1]} : vector<10x64xf32> to vector<1x32xf32>
    %11 = vector.extract_strided_slice %1 {offsets = [9, 0], sizes = [1, 32], strides = [1, 1]} : vector<10x64xf32> to vector<1x32xf32>
    %c0_3 = arith.constant 0 : index
    %c0_4 = arith.constant 0 : index
    %12 = vector.load %arg2[%c0_3, %c0_4] : memref<32x32xf32, #tpu.memory_space<vmem>>, vector<32x32xf32>
    %cst = arith.constant dense<0.000000e+00> : vector<8x32xf32>
    %13 = tpu.matmul %0, %12, %cst {dimension_numbers = #tpu.dot_dimension_numbers<[1], [0], [0], [1], [0, 0, 1, 1], [], []>} : vector<8x32xf32>, vector<32x32xf32>, vector<8x32xf32> -> vector<8x32xf32>
    %14 = vector.broadcast %2 : vector<1x32xf32> to vector<8x32xf32>
    %15 = arith.addf %13, %14 : vector<8x32xf32>
    %c0_5 = arith.constant 0 : index
    %c0_6 = arith.constant 0 : index
    %16 = vector.load %arg3[%c0_5, %c0_6] : memref<32x32xf32, #tpu.memory_space<vmem>>, vector<32x32xf32>
    %cst_7 = arith.constant dense<0.000000e+00> : vector<8x32xf32>
    %17 = tpu.matmul %0, %16, %cst_7 {dimension_numbers = #tpu.dot_dimension_numbers<[1], [0], [0], [1], [0, 0, 1, 1], [], []>} : vector<8x32xf32>, vector<32x32xf32>, vector<8x32xf32> -> vector<8x32xf32>
    %18 = vector.broadcast %3 : vector<1x32xf32> to vector<8x32xf32>
    %19 = arith.addf %17, %18 : vector<8x32xf32>
    %c0_8 = arith.constant 0 : index
    %c0_9 = arith.constant 0 : index
    %20 = vector.load %arg4[%c0_8, %c0_9] : memref<32x32xf32, #tpu.memory_space<vmem>>, vector<32x32xf32>
    %cst_10 = arith.constant dense<0.000000e+00> : vector<8x32xf32>
    %21 = tpu.matmul %0, %20, %cst_10 {dimension_numbers = #tpu.dot_dimension_numbers<[1], [0], [0], [1], [0, 0, 1, 1], [], []>} : vector<8x32xf32>, vector<32x32xf32>, vector<8x32xf32> -> vector<8x32xf32>
    %22 = vector.broadcast %4 : vector<1x32xf32> to vector<8x32xf32>
    %23 = arith.addf %21, %22 : vector<8x32xf32>
    %c0_11 = arith.constant 0 : index
    %c0_12 = arith.constant 0 : index
    %c0_13 = arith.constant 0 : index
    %24 = vector.load %arg9[%c0_11, %c0_12, %c0_13] : memref<4x8x32xf32, #tpu.memory_space<vmem>>, vector<4x8x32xf32>
    %25 = vector.shape_cast %15 : vector<8x32xf32> to vector<1x8x32xf32>
    %26 = vector.broadcast %25 : vector<1x8x32xf32> to vector<4x8x32xf32>
    %27 = arith.mulf %24, %26 : vector<4x8x32xf32>
    %28 = vector.shape_cast %27 : vector<4x8x32xf32> to vector<32x32xf32>
    %cst_14 = arith.constant dense<0.000000e+00> : vector<32x8xf32>
    %29 = tpu.matmul %28, %19, %cst_14 {dimension_numbers = #tpu.dot_dimension_numbers<[1], [1], [0], [0], [0, 0, 1, 0], [], []>} : vector<32x32xf32>, vector<8x32xf32>, vector<32x8xf32> -> vector<32x8xf32>
    %cst_15 = arith.constant dense<0xFF800000> : vector<32xf32>
    %30 = vector.multi_reduction <maximumf>, %29, %cst_15 [1] : vector<32x8xf32> to vector<32xf32>
    %31 = vector.shape_cast %30 : vector<32xf32> to vector<32x1xf32>
    %32 = vector.broadcast %31 : vector<32x1xf32> to vector<32x8xf32>
    %33 = arith.subf %29, %32 : vector<32x8xf32>
    %34 = math.exp %33 : vector<32x8xf32>
    %cst_16 = arith.constant dense<0.000000e+00> : vector<32xf32>
    %35 = vector.multi_reduction <add>, %34, %cst_16 [1] : vector<32x8xf32> to vector<32xf32>
    %36 = vector.shape_cast %35 : vector<32xf32> to vector<32x1xf32>
    %37 = tpu.reciprocal %36 {approx = true} : vector<32x1xf32> -> vector<32x1xf32>
    %38 = vector.broadcast %37 : vector<32x1xf32> to vector<32x8xf32>
    %39 = arith.mulf %34, %38 : vector<32x8xf32>
    %40 = vector.shape_cast %23 : vector<8x32xf32> to vector<1x8x32xf32>
    %41 = vector.broadcast %40 : vector<1x8x32xf32> to vector<4x8x32xf32>
    %42 = arith.mulf %24, %41 : vector<4x8x32xf32>
    %43 = vector.shape_cast %42 : vector<4x8x32xf32> to vector<32x32xf32>
    %c0_17 = arith.constant 0 : index
    %c0_18 = arith.constant 0 : index
    %44 = vector.load %arg5[%c0_17, %c0_18] : memref<32x32xf32, #tpu.memory_space<vmem>>, vector<32x32xf32>
    %cst_19 = arith.constant dense<0.000000e+00> : vector<32x32xf32>
    %45 = tpu.matmul %43, %44, %cst_19 {dimension_numbers = #tpu.dot_dimension_numbers<[1], [0], [0], [1], [0, 0, 1, 1], [], []>} : vector<32x32xf32>, vector<32x32xf32>, vector<32x32xf32> -> vector<32x32xf32>
    %46 = vector.shape_cast %39 : vector<32x8xf32> to vector<4x8x8xf32>
    %47 = vector.shape_cast %45 : vector<32x32xf32> to vector<4x8x32xf32>
    "tpu.trace_start"() <{level = 10 : i32, message = "hij,hje->hie"}> : () -> ()
    %cst_20 = arith.constant dense<0.000000e+00> : vector<4x8x32xf32>
    %48 = tpu.matmul %46, %47, %cst_20 {dimension_numbers = #tpu.dot_dimension_numbers<[2], [1], [1], [2], [0, 0, 0, 1, 1, 2], [0], [0]>} : vector<4x8x8xf32>, vector<4x8x32xf32>, vector<4x8x32xf32> -> vector<4x8x32xf32>
    "tpu.trace_stop"() : () -> ()
    %cst_21 = arith.constant dense<0.000000e+00> : vector<8x32xf32>
    %49 = vector.multi_reduction <add>, %48, %cst_21 [0] : vector<4x8x32xf32> to vector<8x32xf32>
    %50 = vector.broadcast %5 : vector<1x32xf32> to vector<8x32xf32>
    %51 = arith.addf %49, %50 : vector<8x32xf32>
    %52 = arith.addf %0, %51 : vector<8x32xf32>
    %cst_22 = arith.constant dense<0.000000e+00> : vector<8xf32>
    %53 = vector.multi_reduction <add>, %52, %cst_22 [1] : vector<8x32xf32> to vector<8xf32>
    %54 = vector.shape_cast %53 : vector<8xf32> to vector<8x1xf32>
    %cst_23 = arith.constant 3.200000e+01 : f32
    %55 = vector.broadcast %cst_23 : f32 to vector<8x1xf32>
    %56 = arith.divf %54, %55 : vector<8x1xf32>
    %57 = vector.broadcast %56 : vector<8x1xf32> to vector<8x32xf32>
    %58 = arith.subf %52, %57 : vector<8x32xf32>
    %59 = arith.mulf %58, %58 : vector<8x32xf32>
    %cst_24 = arith.constant dense<0.000000e+00> : vector<8xf32>
    %60 = vector.multi_reduction <add>, %59, %cst_24 [1] : vector<8x32xf32> to vector<8xf32>
    %61 = vector.shape_cast %60 : vector<8xf32> to vector<8x1xf32>
    %cst_25 = arith.constant 3.200000e+01 : f32
    %62 = vector.broadcast %cst_25 : f32 to vector<8x1xf32>
    %63 = arith.divf %61, %62 : vector<8x1xf32>
    %cst_26 = arith.constant 9.99999974E-6 : f32
    %64 = vector.broadcast %cst_26 : f32 to vector<8x1xf32>
    %65 = arith.addf %63, %64 : vector<8x1xf32>
    %66 = math.rsqrt %65 : vector<8x1xf32>
    %67 = vector.broadcast %66 : vector<8x1xf32> to vector<8x32xf32>
    %68 = arith.mulf %58, %67 : vector<8x32xf32>
    %69 = vector.broadcast %8 : vector<1x32xf32> to vector<8x32xf32>
    %70 = arith.mulf %68, %69 : vector<8x32xf32>
    %71 = vector.broadcast %9 : vector<1x32xf32> to vector<8x32xf32>
    %72 = arith.addf %70, %71 : vector<8x32xf32>
    %c0_27 = arith.constant 0 : index
    %c0_28 = arith.constant 0 : index
    %73 = vector.load %arg6[%c0_27, %c0_28] : memref<32x64xf32, #tpu.memory_space<vmem>>, vector<32x64xf32>
    %cst_29 = arith.constant dense<0.000000e+00> : vector<8x64xf32>
    %74 = tpu.matmul %72, %73, %cst_29 {dimension_numbers = #tpu.dot_dimension_numbers<[1], [0], [0], [1], [0, 0, 1, 1], [], []>} : vector<8x32xf32>, vector<32x64xf32>, vector<8x64xf32> -> vector<8x64xf32>
    %75 = vector.broadcast %6 : vector<1x64xf32> to vector<8x64xf32>
    %76 = arith.addf %74, %75 : vector<8x64xf32>
    %cst_30 = arith.constant 0.000000e+00 : f32
    %77 = vector.broadcast %cst_30 : f32 to vector<8x64xf32>
    %78 = arith.maximumf %76, %77 : vector<8x64xf32>
    %c0_31 = arith.constant 0 : index
    %c0_32 = arith.constant 0 : index
    %79 = vector.load %arg7[%c0_31, %c0_32] : memref<64x32xf32, #tpu.memory_space<vmem>>, vector<64x32xf32>
    %cst_33 = arith.constant dense<0.000000e+00> : vector<8x32xf32>
    %80 = tpu.matmul %78, %79, %cst_33 {dimension_numbers = #tpu.dot_dimension_numbers<[1], [0], [0], [1], [0, 0, 1, 1], [], []>} : vector<8x64xf32>, vector<64x32xf32>, vector<8x32xf32> -> vector<8x32xf32>
    %81 = vector.broadcast %7 : vector<1x32xf32> to vector<8x32xf32>
    %82 = arith.addf %80, %81 : vector<8x32xf32>
    %83 = arith.addf %72, %82 : vector<8x32xf32>
    %cst_34 = arith.constant dense<0.000000e+00> : vector<8xf32>
    %84 = vector.multi_reduction <add>, %83, %cst_34 [1] : vector<8x32xf32> to vector<8xf32>
    %85 = vector.shape_cast %84 : vector<8xf32> to vector<8x1xf32>
    %cst_35 = arith.constant 3.200000e+01 : f32
    %86 = vector.broadcast %cst_35 : f32 to vector<8x1xf32>
    %87 = arith.divf %85, %86 : vector<8x1xf32>
    %88 = vector.broadcast %87 : vector<8x1xf32> to vector<8x32xf32>
    %89 = arith.subf %83, %88 : vector<8x32xf32>
    %90 = arith.mulf %89, %89 : vector<8x32xf32>
    %cst_36 = arith.constant dense<0.000000e+00> : vector<8xf32>
    %91 = vector.multi_reduction <add>, %90, %cst_36 [1] : vector<8x32xf32> to vector<8xf32>
    %92 = vector.shape_cast %91 : vector<8xf32> to vector<8x1xf32>
    %cst_37 = arith.constant 3.200000e+01 : f32
    %93 = vector.broadcast %cst_37 : f32 to vector<8x1xf32>
    %94 = arith.divf %92, %93 : vector<8x1xf32>
    %cst_38 = arith.constant 9.99999974E-6 : f32
    %95 = vector.broadcast %cst_38 : f32 to vector<8x1xf32>
    %96 = arith.addf %94, %95 : vector<8x1xf32>
    %97 = math.rsqrt %96 : vector<8x1xf32>
    %98 = vector.broadcast %97 : vector<8x1xf32> to vector<8x32xf32>
    %99 = arith.mulf %89, %98 : vector<8x32xf32>
    %100 = vector.broadcast %10 : vector<1x32xf32> to vector<8x32xf32>
    %101 = arith.mulf %99, %100 : vector<8x32xf32>
    %102 = vector.broadcast %11 : vector<1x32xf32> to vector<8x32xf32>
    %103 = arith.addf %101, %102 : vector<8x32xf32>
    %c0_39 = arith.constant 0 : index
    %c0_40 = arith.constant 0 : index
    %104 = vector.load %arg10[%c0_39, %c0_40] : memref<8x32xf32, #tpu.memory_space<vmem>>, vector<8x32xf32>
    tpu.vector_store %arg10[%c0_39, %c0_40], %103 {strides = array<i32>} : memref<8x32xf32, #tpu.memory_space<vmem>>, vector<8x32xf32>,
    return
  }
  func.func @transform_0(%arg0: i32) -> (i32, i32) {
    %c0_i32 = arith.constant 0 : i32
    %c0_i32_0 = arith.constant 0 : i32
    return %arg0, %c0_i32 : i32, i32
  }
  func.func @transform_1(%arg0: i32) -> (i32, i32) {
    %c0_i32 = arith.constant 0 : i32
    %c0_i32_0 = arith.constant 0 : i32
    %c0_i32_1 = arith.constant 0 : i32
    return %c0_i32, %c0_i32_0 : i32, i32
  }
  func.func @transform_2(%arg0: i32) -> (i32, i32) {
    %c0_i32 = arith.constant 0 : i32
    %c0_i32_0 = arith.constant 0 : i32
    %c0_i32_1 = arith.constant 0 : i32
    return %c0_i32, %c0_i32_0 : i32, i32
  }
  func.func @transform_3(%arg0: i32) -> (i32, i32) {
    %c0_i32 = arith.constant 0 : i32
    %c0_i32_0 = arith.constant 0 : i32
    %c0_i32_1 = arith.constant 0 : i32
    return %c0_i32, %c0_i32_0 : i32, i32
  }
  func.func @transform_4(%arg0: i32) -> (i32, i32) {
    %c0_i32 = arith.constant 0 : i32
    %c0_i32_0 = arith.constant 0 : i32
    %c0_i32_1 = arith.constant 0 : i32
    return %c0_i32, %c0_i32_0 : i32, i32
  }
  func.func @transform_5(%arg0: i32) -> (i32, i32) {
    %c0_i32 = arith.constant 0 : i32
    %c0_i32_0 = arith.constant 0 : i32
    %c0_i32_1 = arith.constant 0 : i32
    return %c0_i32, %c0_i32_0 : i32, i32
  }
  func.func @transform_6(%arg0: i32) -> (i32, i32) {
    %c0_i32 = arith.constant 0 : i32
    %c0_i32_0 = arith.constant 0 : i32
    %c0_i32_1 = arith.constant 0 : i32
    return %c0_i32, %c0_i32_0 : i32, i32
  }
  func.func @transform_7(%arg0: i32) -> (i32, i32) {
    %c0_i32 = arith.constant 0 : i32
    %c0_i32_0 = arith.constant 0 : i32
    %c0_i32_1 = arith.constant 0 : i32
    return %c0_i32, %c0_i32_0 : i32, i32
  }
  func.func @transform_8(%arg0: i32) -> (i32, i32, i32) {
    %c0_i32 = arith.constant 0 : i32
    %c0_i32_0 = arith.constant 0 : i32
    %c0_i32_1 = arith.constant 0 : i32
    %c0_i32_2 = arith.constant 0 : i32
    return %c0_i32, %c0_i32_0, %c0_i32_1 : i32, i32, i32
  }
  func.func @transform_9(%arg0: i32) -> (i32, i32) {
    %c0_i32 = arith.constant 0 : i32
    %c0_i32_0 = arith.constant 0 : i32
    return %arg0, %c0_i32 : i32, i32
  }
}

</mosaic_0001>

<bundles_post_ra>
// kernel: transformer_block.1
= control target key start
LH: loop header
LB: loop body
LE: loop exit
PB: predicated region body
PF: predicated region fallthrough
CT: control target
= control target key end

     0   :  { %s2516_s0 = inlined_call_operand.hbm [shape: f32[16,32], index: 0, kind: input, shape index: {}]   ;;  %s2517_s1 = inlined_call_operand.vmem [shape: f32[32,32], index: 1, kind: input, shape index: {}]   ;;  %s2518_s2 = inlined_call_operand.vmem [shape: f32[32,32], index: 2, kind: input, shape index: {}]   ;;  %s2519_s3 = inlined_call_operand.vmem [shape: f32[32,32], index: 3, kind: input, shape index: {}]   ;;  %s2520_s4 = inlined_call_operand.hbm [shape: f32[32,32], index: 4, kind: input, shape index: {}]   ;;  %s2521_s5 = inlined_call_operand.hbm [shape: f32[32,64], index: 5, kind: input, shape index: {}]   ;;  %s2522_s6 = inlined_call_operand.vmem [shape: f32[64,32], index: 6, kind: input, shape index: {}]   ;;  %s2523_s7 = inlined_call_operand.hbm [shape: f32[10,64], index: 7, kind: input, shape index: {}]   ;;  %s2524_s8 = inlined_call_operand.hbm [shape: f32[4,8,32], index: 8, kind: input, shape index: {}]   ;;  %s2525_s9 = inlined_call_operand.hbm [shape: f32[16,32], index: 9, kind: output, shape index: {}]  }
   0x1   :  { %2530 = sst [smem:[#allocation16_spill]] %s2520_s4 }
   0x2   :  { %2531 = sst [smem:[#allocation17_spill]] %s2521_s5 }
   0x3   :  { %2532 = sst [smem:[#allocation18_spill]] %s2523_s7 }
   0x4   :  { %2533 = sst [smem:[#allocation19_spill]] %s2524_s8 }
   0x5   :  { %14 = vsyncpa [#allocation3], 0 }
   0x6   :  { %16 = vsyncpa [#allocation3 + $0x1], 0 }
   0x7   :  { %17 = vsyncpa [#allocation6], 0 }
   0x8   :  { %18 = vsyncpa [#allocation9], 0 }
   0x9   :  { %19 = vsyncpa [#allocation4], 0 }
   0xa   :  { %21 = vsyncpa [#allocation4 + $0x1], 0  ;;  %s2119_s30 = smov 0   ;;  %s2121_s10 = smov 0  }
   0xb   :  { %s2123_s11 = smov 0   ;;  %s2125_s12 = smov 0  }
   0xc LB: > { %s2059_s13 = smov [#allocation5]   ;;  %s2140_s15 = sadd.s32 4294967295, %s2057_s12   ;;  %s2057_s12 = sphi %s2125_s12, %s2557_s12   ;;  %s2053_s11 = sphi %s2123_s11, %s2556_s11   ;;  %s2049_s10 = sphi %s2121_s10, %s2555_s10   ;;  %s2045_s30 = sphi %s2119_s30, %s2554_s30  }
   0xd   : > { %s273_s14 = sshll.u32 %s2059_s13, 4  ;;  %p1550_p0 = scmp.ge.s32.totalorder %s2057_s12, 1  ;;  %s274_s14 = int_to_ptr.vmem [resolvable:$true] %s273_s14 }
   0xe   : > { %p2526_p1 = scmp.eq.s32.totalorder %s2140_s15, 0  ;;  %p252_p2 = scmp.lt.s32.totalorder %s2057_s12, 3 }
   0xf   : > { %s2060_s17 = smov [#allocation8]   ;;  %s2061_s20 = smov [#allocation7]  }
  0x10   : > { %p2145_p3 = pnand %p1550_p0, %p252_p2  ;;  %s302_s18 = sshll.u32 %s2060_s17, 4  ;;  %s2158_s18 = int_to_ptr.vmem [resolvable:$true] %s302_s18 }
  0x11   : > { %s286_s21 = sshll.u32 %s2061_s20, 4  ;;  %s1864_s22 = scalar_lea.vmem %s274_s14, 512  ;;  %s2160_s21 = int_to_ptr.vmem [resolvable:$true] %s286_s21 }
  0x12   : > { %s2534_s16 = scalar_select %p2145_p3, 1, 0 }
  0x13   : > { %p1762_p5 = pneg %p2145_p3  ;;  %p1865_p8 = scmp.ne.s32.totalorder %s274_s14, %s1864_s22 }
  0x14   : > { %p1872_p11 = scmp.lt.s32.totalorder %s274_s14, %s274_s14  ;;  %p1873_p12 = scmp.lt.s32.totalorder %s1864_s22, %s1864_s22 }
  0x15   : > { %p2154_p6 = pnand %p1762_p5, %p2526_p1 }
  0x16   : > { %p1874_p13 = por %p1873_p12, %p1872_p11 }
  0x17   : > { %p1855_p7 = pneg %p2154_p6 }
  0x19   : > { %p1867_p9 = pnand %p1865_p8, %p1855_p7 }
  0x1b   : > { %p1868_p10 = pneg %p1867_p9 }
  0x1d   : > { %p1875_p0 = pnand %p1874_p13, %p1868_p10 }
  0x1f   : > { %1878 = shalt.err (!%p1875_p0)
}
  0x20   : > { %s2062_s23 = smov 128   ;;  %s2063_s24 = smov 8  }
  0x21   : > { %s2536_s4 = sld [smem:[#allocation16_spill]]  ;;  %s1890_s27 = scalar_lea.vmem %s2158_s18, 256 }
  0x22   : > { %p1891_p2 = scmp.ne.s32.totalorder %s2158_s18, %s1890_s27  ;;  %p1898_p9 = scmp.lt.s32.totalorder %s2158_s18, %s2158_s18 }
  0x23   : > { %p1899_p10 = scmp.lt.s32.totalorder %s1890_s27, %s1890_s27 }
  0x24   : > { %p1893_p5 = pnand %p1891_p2, %p1855_p7 }
  0x25   : > { %p1900_p11 = por %p1899_p10, %p1898_p9 }
  0x26   : > { %p1894_p8 = pneg %p1893_p5 }
  0x27   : > { %1765 = dma.hbm_to_vmem [thread:$0]  (!%p2154_p6), %s2536_s4, 512, %s274_s14, [#allocation6], %s2062_s23, %s2062_s23, %s2063_s24  }
  0x28   : > { %p1901_p12 = pnand %p1900_p11, %p1894_p8 }
  0x2a   : > { %1904 = shalt.err (!%p1901_p12)
}
  0x2b   : > { %s2537_s7 = sld [smem:[#allocation18_spill]]  ;;  %s1916_s13 = scalar_lea.vmem %s2160_s21, 512 }
  0x2c   : > { %p1917_p13 = scmp.ne.s32.totalorder %s2160_s21, %s1916_s13  ;;  %p1924_p5 = scmp.lt.s32.totalorder %s2160_s21, %s2160_s21 }
  0x2d   : > { %p1925_p8 = scmp.lt.s32.totalorder %s1916_s13, %s1916_s13 }
  0x2e   : > { %p1919_p0 = pnand %p1917_p13, %p1855_p7 }
  0x2f   : > { %p1926_p9 = por %p1925_p8, %p1924_p5 }
  0x30   : > { %p1920_p2 = pneg %p1919_p0 }
  0x31   : > { %1771 = dma.hbm_to_vmem [thread:$0]  (!%p2154_p6), %s2537_s7, 256, %s2158_s18, [#allocation9], %s2062_s23, %s2062_s23, %s2063_s24  }
  0x32   : > { %p1927_p10 = pnand %p1926_p9, %p1920_p2 }
  0x34   : > { %1930 = shalt.err (!%p1927_p10)
}
  0x35   : > { %s2538_s5 = sld [smem:[#allocation17_spill]]  ;;  %s2064_s18 = smov [#allocation10]  }
  0x36   : > { %s315_s20 = sshll.u32 %s2064_s18, 4  ;;  %s316_s20 = int_to_ptr.vmem [resolvable:$true] %s315_s20 }
  0x37   : > { %s1942_s22 = scalar_lea.vmem %s316_s20, 512  ;;  %p1950_p0 = scmp.lt.s32.totalorder %s316_s20, %s316_s20 }
  0x38   : > { %p1943_p11 = scmp.ne.s32.totalorder %s316_s20, %s1942_s22  ;;  %p1951_p2 = scmp.lt.s32.totalorder %s1942_s22, %s1942_s22 }
  0x3a   : > { %p1945_p12 = pnand %p1943_p11, %p1855_p7  ;;  %p1952_p5 = por %p1951_p2, %p1950_p0 }
  0x3b   : > { %1768 = dma.hbm_to_vmem [thread:$0]  (!%p2154_p6), %s2538_s5, 512, %s2160_s21, [#allocation6], %s2062_s23, %s2062_s23, %s2063_s24  }
  0x3c   : > { %p1946_p13 = pneg %p1945_p12 }
  0x3e   : > { %p1953_p8 = pnand %p1952_p5, %p1946_p13 }
  0x40   : > { %1956 = shalt.err (!%p1953_p8)
}
  0x41   : > { %s2539_s8 = sld [smem:[#allocation19_spill]]  ;;  %s1549_s19 = sadd.s32 4294967294, %s2057_s12  }
  0x42   : > { %s2220_s26 = sadd.s32 1, %s2057_s12   ;;  %s34_s28 = sadd.s32 1, %s2053_s11 }
  0x43   : > { %s31_s27 = ssub.s32 %s2057_s12, %s2220_s26  ;;  %p41_p9 = scmp.ne.s32.totalorder %s2053_s11, %s2049_s10 }
  0x44   : > { %p32_p7 = scmp.eq.s32.totalorder %s31_s27, 0  ;;  %p42_p10 = scmp.eq.s32.totalorder %s2057_s12, 0 }
  0x45   : > { %p47_p11 = scmp.ne.s32.totalorder %s2049_s10, %s2045_s30  ;;  %p239_p13 = scmp.eq.s32.totalorder %s2140_s15, 1 }
  0x46   : > { %s2231_s29 = scalar_select %p32_p7, %s2053_s11, %s34_s28  }
  0x47   : > { %1774 = dma.hbm_to_vmem [thread:$0]  (!%p2154_p6), %s2539_s8, 512, %s316_s20, [#allocation9], %s2062_s23, %s2062_s23, %s2063_s24  }
  0x48   : > { %p2233_p12 = por %p42_p10, %p41_p9  ;;  %p2239_p6 = por %p2526_p1, %p47_p11 }
  0x49   : > { %p245_p0 = scmp.eq.s32.totalorder %s1549_s19, 1  ;;  %p1787_p2 = scmp.lt.s32.totalorder %s2057_s12, 2 }
  0x4a   : > { %s2541_s23 = scalar_select %p2239_p6, 1, 0 }
  0x4b   : > { %s329_s24 = sand.u32 1, %s2053_s11   ;;  %p2246_p5 = por %p239_p13, %p41_p9 }
  0x4c   : > { %p2250_p8 = por %p245_p0, %p47_p11  ;;  %s1556_s18 = sshll.u32 %s329_s24, 3 }
  0x4d   : > { %s2542_s14 = scalar_select %p2246_p5, 1, 0 }
  0x4e   : > { %s2543_s17 = scalar_select %p2250_p8, 1, 0 }
  0x4f   : > { %s1557_s20 = sshll.u32 %s2057_s12, 7  ;;  %s333_s19 = scalar_lea.vmem [#allocation2], %s1556_s18 }
  0x50   : > { %s2258_s25 = scalar_lea.hbm %s2516_s0, %s1557_s20  ;;  %s340_s27 = sshll.u32 %s333_s19, 4  ;;  %s341_s27 = int_to_ptr.vmem [resolvable:$true] %s340_s27 }
  0x51   : > { %p2262_p7 = pnand %p1787_p2, %p2233_p12  ;;  %s330_s4 = scalar_lea.sflag [#allocation3], %s329_s24 }
  0x52   : > { %s1957_s5 = scalar_lea.hbm %s2258_s25, 128  ;;  %s1962_s21 = scalar_lea.hbm %s2516_s0, 256 }
  0x53   : > { %p1958_p9 = scmp.ne.s32.totalorder %s2258_s25, %s1957_s5  ;;  %p1959_p10 = pneg %p2262_p7 }
  0x54   : > { %p1963_p0 = scmp.lt.s32.totalorder %s2258_s25, %s2516_s0  ;;  %p1964_p12 = scmp.lt.s32.totalorder %s1962_s21, %s1957_s5 }
  0x55   : > { %p1960_p11 = pnand %p1959_p10, %p1958_p9 }
  0x56   : > { %p1965_p2 = por %p1964_p12, %p1963_p0 }
  0x57   : > { %p1961_p13 = pneg %p1960_p11 }
  0x59   : > { %p1966_p4 = pnand %p1965_p2, %p1961_p13 }
  0x5b   : > { %1969 = shalt.err (!%p1966_p4)
}
  0x5c   : > { %s1970_s13 = scalar_lea.vmem %s341_s27, 128  ;;  %s2065_s24 = smov [#allocation2]  }
  0x5d   : > { %p1971_p1 = scmp.ne.s32.totalorder %s341_s27, %s1970_s13  ;;  %s1975_s7 = sshll.u32 %s2065_s24, 4  ;;  %s1976_s7 = int_to_ptr.vmem [resolvable:$false] %s1975_s7 }
  0x5e   : > { %s1977_s8 = scalar_lea.vmem %s1976_s7, 256  ;;  %p1978_p9 = scmp.lt.s32.totalorder %s341_s27, %s1976_s7 }
  0x5f   : > { %p1973_p8 = pnand %p1971_p1, %p1959_p10  ;;  %p1979_p11 = scmp.lt.s32.totalorder %s1977_s8, %s1970_s13 }
  0x61   : > { %p1974_p5 = pneg %p1973_p8  ;;  %p1980_p6 = por %p1979_p11, %p1978_p9 }
  0x63   : > { %p1981_p3 = pnand %p1980_p6, %p1974_p5 }
  0x65   : > { %1984 = shalt.err (!%p1981_p3)
}
  0x66   : > { %1778 = dma.hbm_to_vmem [thread:$0]  (!%p2262_p7), %s2258_s25, 128, %s341_s27, %s330_s4  }
  0x67   : > { %p2545_p13 = scmp.ne.s32.totalorder %s2534_s16, 0 }
  0x68   : > { %s2283_s5 = sand.u32 (!%p2545_p13), 1, %s2049_s10   ;;  %p2546_p1 = scmp.ne.s32.totalorder (!%p2545_p13), %s2541_s23, 0 }
  0x69   : > { %349 = sbr.rel (%p2545_p13) target bundleno = 2068 (0x814), region = 56  ;;  %s1559_s20 = sshll.u32 (!%p2545_p13), %s2283_s5, 3 }
  0x6a   : > { %s352_s7 = scalar_lea.sflag (!%p2545_p13), [#allocation3], %s2283_s5  ;;  %s2289_s8 = scalar_lea.vmem (!%p2545_p13), [#allocation2], %s1559_s20 }
  0x6e   : > { %2028 = dma.done.wait (%p2546_p1), %s352_s7, 128  }
  0x6f   : > { %2030 = vsyncadd (%p2546_p1), %s352_s7, 4294967168  ;;  %p2547_p3 = scmp.eq.s32.totalorder %s2140_s15, 0 }
  0x71   : > { %2032 = dma.done.wait (%p2547_p3), [#allocation6], 1024   ;;  %p2548_p4 = pmov %p2547_p3 }
  0x72   : > { %p2549_p6 = pmov %p2547_p3 }
  0x73   : > { %2034 = vsyncadd (%p2548_p4), [#allocation6], 4294966272 }
  0x74   : > { %2036 = dma.done.wait (%p2549_p6), [#allocation9], 768   ;;  %p2550_p5 = pmov %p2547_p3 }
  0x75   : > { %v2066_v0 = vmov 0.0   ;;  %vm2067_vm0 = vmmov 0   ;;  %v412_v1 = vld [vmem:[%s2517_s1 + $0x18] sm:$0xff]  ;;  %v411_v3 = vld [vmem:[%s2517_s1 + $0x10] sm:$0xff]  ;;  %v410_v5 = vld [vmem:[%s2517_s1 + $0x8] sm:$0xff]  ;;  %vm417_vm1 = vcmask 261120   ;;  %v413_v14 = vlaneseq }
  0x76   : > { %2038 = vsyncadd (%p2550_p5), [#allocation9], 4294966528  ;;  %1637 = vmatprep.subr.mxu0 %v2066_v0  ;;  %1648 = vmatprep.subr.mxu1 %v2066_v0  ;;  %v494_v2 = vld [vmem:[%s2518_s2 + $0x18] sm:$0xff]  ;;  %v493_v4 = vld [vmem:[%s2518_s2 + $0x10] sm:$0xff]  ;;  %vm755_vm2 = vcmask 64512   ;;  %vm1328_vm3 = vcmask 523264  }
  0x77   : > { %1645 = vmatprep.mubr.msk.f32.mxu0 %vm2067_vm0, %v2066_v0  ;;  %1656 = vmatprep.mubr.msk.f32.mxu1 %vm2067_vm0, %v2066_v0  ;;  %v492_v6 = vld [vmem:[%s2518_s2 + $0x8] sm:$0xff]  ;;  %v409_v7 = vld [vmem:[%s2517_s1] sm:$0xff]  ;;  %v572_v10 = vld [vmem:[%s2519_s3 + $0x18] sm:$0xff]  ;;  %v2369_v15 = vshrl.u32 %v413_v14, 7  ;;  %s1584_s7 = sshll.u32 %s2140_s15, 7  ;;  %s405_s4 = scalar_lea.vmem [#allocation11], %s1559_s20 }
  0x78   : > { %1638 = vmatpush3.msra.mxu0 %v412_v1  ;;  %1649 = vmatpush3.msra.mxu1 %v494_v2  ;;  %v491_v8 = vld [vmem:[%s2518_s2] sm:$0xff]  ;;  %v571_v11 = vld [vmem:[%s2519_s3 + $0x10] sm:$0xff]  ;;  %v570_v12 = vld [vmem:[%s2519_s3 + $0x8] sm:$0xff]  ;;  %s1441_s16 = sshll.u32 %s405_s4, 4  ;;  %s1439_s25 = scalar_lea.hbm %s2525_s9, %s1584_s7  ;;  %s1442_s16 = int_to_ptr.vmem [resolvable:$true] %s1441_s16 }
  0x79   : > { %1639 = vmatprep.subr.mxu0 %v2066_v0  ;;  %1650 = vmatprep.subr.mxu1 %v2066_v0  ;;  %v2338_v9 = vld [vmem:[%s2289_s8] sm:$0xff]  ;;  %v415_v16 = vsub.s32 0, %v2369_v15  ;;  %v497_v17 = vsub.s32 1, %v2369_v15  ;;  %v2373_v18 = vld [vmem:[#allocation8] sm:$0xff]  ;;  %v650_v33 = vld [vmem:[#allocation10 + $0x18] sm:$0xff]  ;;  %v575_v36 = vsub.s32 2, %v2369_v15 }
  0x7a   : > { %1640 = vmatpush3.msra.mxu0 %v411_v3  ;;  %1651 = vmatpush3.msra.mxu1 %v493_v4  ;;  %v569_v13 = vld [vmem:[%s2519_s3] sm:$0xff]  ;;  %v648_v22 = vld [vmem:[#allocation10 + $0x8] sm:$0xff]  ;;  %v649_v31 = vld [vmem:[#allocation10 + $0x10] sm:$0xff]  ;;  %s1428_s27 = scalar_lea.sflag [#allocation4], %s2283_s5  ;;  %s1985_s28 = scalar_lea.vmem %s1442_s16, 128 }
  0x7b   : > { %1641 = vmatprep.subr.mxu0 %v2066_v0  ;;  %1652 = vmatprep.subr.mxu1 %v2066_v0  ;;  %v416_v19 = vrot.slane %v2373_v18, %v415_v16  ;;  %v498_v20 = vrot.slane %v2373_v18, %v497_v17  ;;  %v647_v24 = vld [vmem:[#allocation10] sm:$0xff]  ;;  %v807_v35 = vld [vmem:[#allocation5 + $0x18] sm:$0xff]  ;;  %v576_v39 = vrot.slane %v2373_v18, %v575_v36  ;;  %v805_v40 = vld [vmem:[#allocation5 + $0x8] sm:$0xff]  ;;  %p1986_p8 = scmp.ne.s32.totalorder %s1442_s16, %s1985_s28  ;;  %p2551_p7 = scmp.ne.s32.totalorder %s2542_s14, 0 }
  0x7c   : > { %1642 = vmatpush3.msra.mxu0 %v410_v5  ;;  %1653 = vmatpush3.msra.mxu1 %v492_v6  ;;  %v806_v38 = vld [vmem:[#allocation5 + $0x10] sm:$0xff]  ;;  %v804_v43 = vld [vmem:[#allocation5] sm:$0xff]  ;;  %s2068_s22 = smov [#allocation11]  }
  0x7d   : > { %1643 = vmatprep.subr.mxu0 %v2066_v0  ;;  %1654 = vmatprep.subr.mxu1 %v2066_v0  ;;  %p1987_p10 = pnand %p1986_p8, %p2551_p7  ;;  %s1989_s15 = sshll.u32 %s2068_s22, 4  ;;  %s1990_s15 = int_to_ptr.vmem [resolvable:$false] %s1989_s15 }
  0x7e   : > { %1644 = vmatpush3.msra.mxu0 %v409_v7  ;;  %1655 = vmatpush3.msra.mxu1 %v491_v8  ;;  %s1991_s20 = scalar_lea.vmem %s1990_s15, 256  ;;  %p1992_p12 = scmp.lt.s32.totalorder %s1442_s16, %s1990_s15 }
  0x7f   : > { %1646 = vmatmul.mubr.msk.f32.vlgmr.msra.gmra.mxu0 %vm417_vm1, %v2338_v9  ;;  %1657 = vmatmul.mubr.msk.f32.vlgmr.msra.gmra.mxu1 %vm417_vm1, %v2338_v9  ;;  %p1988_p0 = pneg %p1987_p10  ;;  %p1993_p2 = scmp.lt.s32.totalorder %s1991_s20, %s1985_s28 }
  0x80   : > { %1659 = vmatprep.subr.mxu0 %v2066_v0  ;;  %1667 = vmatprep.mubr.msk.f32.mxu0 %vm2067_vm0, %v2066_v0 }
  0x81   : > { %1660 = vmatpush3.msra.mxu0 %v572_v10  ;;  %p1994_p9 = por %p1993_p2, %p1992_p12 }
  0x82   : > { %1661 = vmatprep.subr.mxu0 %v2066_v0 }
  0x83   : > { %1662 = vmatpush3.msra.mxu0 %v571_v11  ;;  %p1995_p11 = pnand %p1994_p9, %p1988_p0 }
  0x84   : > { %1663 = vmatprep.subr.mxu0 %v2066_v0 }
  0x85   : > { %1664 = vmatpush3.msra.mxu0 %v570_v12 }
  0x86   : > { %1665 = vmatprep.subr.mxu0 %v2066_v0 }
  0x87   : > { %1666 = vmatpush3.msra.mxu0 %v569_v13 }
  0x88   : > { %1668 = vmatmul.mubr.msk.f32.vlgmr.msra.gmra.mxu0 %vm417_vm1, %v2338_v9  ;;  %1692 = vmatprep.subr.mxu0 %v2066_v0 }
  0x89   : > { %1694 = vmatprep.mubr.msk.f32.mxu0 %vm2067_vm0, %v2066_v0 }
 0x13f   : > { %v487_v21 = vpop.f32.mrf.mxu0  ;;  %v565_v23 = vpop.f32.mrf.mxu1 }
 0x140   : > { %v488_v25 = vadd.f32 %v487_v21, %v416_v19  ;;  %v566_v26 = vadd.f32 %v565_v23, %v498_v20 }
 0x141   : > { %v1647_v27 = vpop.f32.mrf.mxu0  ;;  %v1658_v28 = vpop.f32.mrf.mxu1 }
 0x142   : > { %v652_v29 = vmul.f32 %v648_v22, %v488_v25  ;;  %1670 = vmatprep.subr.msk.mxu1 %vm417_vm1, %v566_v26  ;;  %v651_v30 = vmul.f32 %v647_v24, %v488_v25  ;;  %v653_v32 = vmul.f32 %v649_v31, %v488_v25  ;;  %v654_v34 = vmul.f32 %v650_v33, %v488_v25 }
 0x143   : > { %1671 = vmatpush3.xpose.msk.msra.mxu1 %vm417_vm1, %v566_v26 }
 0x144   : > { %1672 = vmatprep.mubr.msk.f32.mxu1 %vm417_vm1, %v651_v30  ;;  %1678 = vmatprep.subr.mxu1 %v807_v35 }
 0x146   : > { %1673 = vmatmul.mubr.msk.f32.vlgmr.msra.gmra.mxu1 %vm417_vm1, %v652_v29 }
 0x147   : > { %1675 = vmatprep.mubr.msk.f32.mxu1 %vm417_vm1, %v653_v32  ;;  %1679 = vmatpush3.msra.mxu1 %v807_v35 }
 0x148   : > { %v643_v37 = vpop.f32.mrf.mxu0  ;;  %1680 = vmatprep.subr.mxu1 %v806_v38 }
 0x149   : > { %v644_v42 = vadd.f32 %v643_v37, %v576_v39  ;;  %1681 = vmatpush3.msra.mxu1 %v806_v38 }
 0x14a   : > { %1676 = vmatmul.mubr.msk.f32.gmra.mxu1 %vm417_vm1, %v654_v34  ;;  %v1669_v41 = vpop.f32.mrf.mxu0  ;;  %1682 = vmatprep.subr.mxu1 %v805_v40 }
 0x14b   : > { %v801_v44 = vmul.f32 %v648_v22, %v644_v42  ;;  %1683 = vmatpush3.msra.mxu1 %v805_v40  ;;  %v800_v45 = vmul.f32 %v647_v24, %v644_v42  ;;  %v802_v46 = vmul.f32 %v649_v31, %v644_v42  ;;  %v803_v47 = vmul.f32 %v650_v33, %v644_v42 }
 0x14c   : > { %1684 = vmatprep.subr.mxu1 %v804_v43  ;;  %v1206_v40 = vsub.s32 3, %v2369_v15 }
 0x14d   : > { %1685 = vmatpush3.msra.mxu1 %v804_v43  ;;  %1686 = vmatprep.mubr.msk.f32.mxu1 %vm417_vm1, %v800_v45 }
 0x14e   : > { %1687 = vmatmul.mubr.msk.f32.vlgmr.msra.gmra.mxu1 %vm417_vm1, %v801_v44  ;;  %1723 = vmatprep.subr.mxu1 %v2066_v0 }
 0x14f   : > { %1689 = vmatprep.mubr.msk.f32.mxu1 %vm417_vm1, %v802_v46 }
 0x152   : > { %1690 = vmatmul.mubr.msk.f32.gmra.mxu1 %vm417_vm1, %v803_v47  ;;  %v1207_v47 = vrot.slane %v2373_v18, %v1206_v40 }
 0x153   : > { %1739 = vmatprep.mubr.msk.f32.mxu1 %vm2067_vm0, %v2066_v0 }
 0x206   : > { %v1674_v48 = vpop.f32.mrf.mxu1 }
 0x207   : > { %v759_v53 = vsel %vm755_vm2, %v1674_v48, -inf }
 0x208   : > { %v736_v49 = vpop.f32.mrf.mxu1 }
 0x209   : > { %v756_v50 = vsel %vm755_vm2, %v736_v49, -inf }
 0x20a   : > { %757 = vmax.xlane.f32.xlu0 %v756_v50  ;;  %v1677_v51 = vpop.f32.mrf.mxu1 }
 0x20b   : > { %v765_v55 = vsel %vm755_vm2, %v1677_v51, -inf }
 0x20c   : > { %v746_v52 = vpop.f32.mrf.mxu1 }
 0x20d   : > { %v762_v54 = vsel %vm755_vm2, %v746_v52, -inf }
 0x20e   : > { %760 = vmax.xlane.f32.xlu0 %v759_v53  ;;  %763 = vmax.xlane.f32.xlu1 %v762_v54  ;;  %v1688_v14 = vpop.f32.mrf.mxu1 }
 0x210   : > { %v886_v19 = vpop.f32.mrf.mxu1 }
 0x211   : > { %1693 = vmatpush3.msra.mxu0 %v886_v19 }
 0x212   : > { %766 = vmax.xlane.f32.xlu1 %v765_v55  ;;  %1697 = vmatprep.subr.mxu0 %v2066_v0  ;;  %v1691_v26 = vpop.f32.mrf.mxu1 }
 0x214   : > { %v896_v30 = vpop.f32.mrf.mxu1 }
 0x293   : > { %v758_v56 = vpop.xlane.xlu0 %757 }
 0x294   : > { %v768_v57 = vsub.f32 %v736_v49, %v758_v56 }
 0x296   : > { %v772_v58 = vmul.f32 1.442695, %v768_v57 }
 0x297   : > { %v761_v59 = vpop.xlane.xlu0 %760  ;;  %v764_v60 = vpop.xlane.xlu1 %763 }
 0x298   : > { %1833 = vpow2.f32 %v772_v58  ;;  %v769_v61 = vsub.f32 %v1674_v48, %v761_v59  ;;  %v770_v62 = vsub.f32 %v746_v52, %v764_v60  ;;  %v1237_v59 = vld [vmem:[#allocation7 + $0x18] sm:$0xff]  ;;  %v1236_v60 = vld [vmem:[#allocation7 + $0x10] sm:$0xff] }
 0x29a   : > { %v774_v63 = vmul.f32 1.442695, %v769_v61  ;;  %v776_v1 = vmul.f32 1.442695, %v770_v62  ;;  %v1235_v61 = vld [vmem:[#allocation7 + $0x8] sm:$0xff] }
 0x29b   : > { %v767_v2 = vpop.xlane.xlu1 %766  ;;  %v1323_v62 = vld [vmem:[%s2522_s6 + $0x38] sm:$0xff] }
 0x29c   : > { %1835 = vpow2.f32 %v774_v63  ;;  %v771_v3 = vsub.f32 %v1677_v51, %v767_v2  ;;  %v1322_v63 = vld [vmem:[%s2522_s6 + $0x30] sm:$0xff]  ;;  %1724 = vmatpush3.msra.mxu1 %v1323_v62  ;;  %v1320_v2 = vld [vmem:[%s2522_s6 + $0x20] sm:$0xff] }
 0x29d   : > { %1837 = vpow2.f32 %v776_v1  ;;  %1725 = vmatprep.subr.mxu1 %v2066_v0  ;;  %v1321_v1 = vld [vmem:[%s2522_s6 + $0x28] sm:$0xff] }
 0x29e   : > { %v778_v4 = vmul.f32 1.442695, %v771_v3  ;;  %1726 = vmatpush3.msra.mxu1 %v1322_v63  ;;  %v1319_v3 = vld [vmem:[%s2522_s6 + $0x18] sm:$0xff] }
 0x29f   : > { %1727 = vmatprep.subr.mxu1 %v2066_v0 }
 0x2a0   : > { %1839 = vpow2.f32 %v778_v4  ;;  %1728 = vmatpush3.msra.mxu1 %v1321_v1 }
 0x2a1   : > { %1729 = vmatprep.subr.mxu1 %v2066_v0 }
 0x2a2   : > { %1730 = vmatpush3.msra.mxu1 %v1320_v2 }
 0x2a3   : > { %1731 = vmatprep.subr.mxu1 %v2066_v0 }
 0x2a4   : > { %1732 = vmatpush3.msra.mxu1 %v1319_v3 }
 0x2a5   : > { %v1834_v5 = vpop.eup %1833  ;;  %1733 = vmatprep.subr.mxu1 %v2066_v0 }
 0x2a6   : > { %v780_v6 = vsel %vm755_vm2, %v1834_v5, 0.0 }
 0x2a7   : > { %781 = vadd.xlane.f32.xlu0 %v780_v6 }
 0x2a9   : > { %v1836_v7 = vpop.eup %1835 }
 0x2aa   : > { %v1838_v8 = vpop.eup %1837  ;;  %v783_v10 = vsel %vm755_vm2, %v1836_v7, 0.0 }
 0x2ab   : > { %784 = vadd.xlane.f32.xlu1 %v783_v10  ;;  %v786_v11 = vsel %vm755_vm2, %v1838_v8, 0.0 }
 0x2ac   : > { %787 = vadd.xlane.f32.xlu0 %v786_v11 }
 0x2ad   : > { %v1840_v12 = vpop.eup %1839 }
 0x2ae   : > { %v789_v13 = vsel %vm755_vm2, %v1840_v12, 0.0 }
 0x2af   : > { %790 = vadd.xlane.f32.xlu1 %v789_v13 }
 0x330   : > { %v782_v20 = vpop.xlane.xlu0 %781 }
 0x331   : > { %1841 = vrcp.f32 %v782_v20  ;;  %v1318_v20 = vld [vmem:[%s2522_s6 + $0x10] sm:$0xff] }
 0x332   : > { %1734 = vmatpush3.msra.mxu1 %v1318_v20 }
 0x333   : > { %1735 = vmatprep.subr.mxu1 %v2066_v0 }
 0x334   : > { %v785_v21 = vpop.xlane.xlu1 %784 }
 0x335   : > { %v788_v22 = vpop.xlane.xlu0 %787  ;;  %1843 = vrcp.f32 %v785_v21  ;;  %v1317_v21 = vld [vmem:[%s2522_s6 + $0x8] sm:$0xff] }
 0x336   : > { %1845 = vrcp.f32 %v788_v22  ;;  %1736 = vmatpush3.msra.mxu1 %v1317_v21  ;;  %v1316_v22 = vld [vmem:[%s2522_s6] sm:$0xff] }
 0x337   : > { %1737 = vmatprep.subr.mxu1 %v2066_v0 }
 0x338   : > { %v791_v23 = vpop.xlane.xlu1 %790  ;;  %1738 = vmatpush3.msra.mxu1 %v1316_v22 }
 0x339   : > { %1847 = vrcp.f32 %v791_v23  ;;  %v1240_v23 = vsub.s32 4, %v2369_v15 }
 0x33e   : > { %v1842_v24 = vpop.eup %1841 }
 0x33f   : > { %v796_v25 = vmul.f32 %v1842_v24, %v1834_v5  ;;  %v1241_v24 = vrot.slane %v2373_v18, %v1240_v23 }
 0x341   : > { %1695 = vmatmul.mubr.msk.f32.vlgmr.msra.gmra.mxu0 %vm755_vm2, %v796_v25 }
 0x342   : > { %v1844_v27 = vpop.eup %1843  ;;  %1698 = vmatpush3.msra.mxu0 %v1688_v14  ;;  %1699 = vmatprep.mubr.msk.f32.mxu0 %vm2067_vm0, %v2066_v0 }
 0x343   : > { %1702 = vmatprep.subr.mxu0 %v2066_v0  ;;  %v797_v28 = vmul.f32 %v1844_v27, %v1836_v7  ;;  %v1846_v29 = vpop.eup %1845  ;;  %v1226_v7 = vsub.s32 6, %v2369_v15 }
 0x344   : > { %v798_v31 = vmul.f32 %v1846_v29, %v1838_v8  ;;  %v1231_v8 = vsub.s32 7, %v2369_v15  ;;  %v1326_v29 = vsub.s32 5, %v2369_v15 }
 0x345   : > { %1700 = vmatmul.mubr.msk.f32.vlgmr.msra.gmra.mxu0 %vm755_vm2, %v797_v28  ;;  %v1227_v10 = vrot.slane %v2373_v18, %v1226_v7 }
 0x346   : > { %1703 = vmatpush3.msra.mxu0 %v896_v30  ;;  %1704 = vmatprep.mubr.msk.f32.mxu0 %vm2067_vm0, %v2066_v0  ;;  %v1848_v32 = vpop.eup %1847  ;;  %v1232_v13 = vrot.slane %v2373_v18, %v1231_v8  ;;  %v1327_v30 = vrot.slane %v2373_v18, %v1326_v29 }
 0x347   : > { %1707 = vmatprep.subr.mxu0 %v2066_v0  ;;  %v799_v33 = vmul.f32 %v1848_v32, %v1840_v12 }
 0x349   : > { %1705 = vmatmul.mubr.msk.f32.vlgmr.msra.gmra.mxu0 %vm755_vm2, %v798_v31 }
 0x34a   : > { %1708 = vmatpush3.msra.mxu0 %v1691_v26  ;;  %1709 = vmatprep.mubr.msk.f32.mxu0 %vm2067_vm0, %v2066_v0 }
 0x34b   : > { %1712 = vmatprep.subr.mxu0 %v2066_v0 }
 0x34d   : > { %1710 = vmatmul.mubr.msk.f32.vlgmr.msra.gmra.mxu0 %vm755_vm2, %v799_v33 }
 0x34e   : > { %1720 = vmatprep.mubr.msk.f32.mxu0 %vm2067_vm0, %v2066_v0  ;;  %1713 = vmatpush3.msra.mxu0 %v1237_v59 }
 0x34f   : > { %1714 = vmatprep.subr.mxu0 %v2066_v0 }
 0x350   : > { %1715 = vmatpush3.msra.mxu0 %v1236_v60 }
 0x351   : > { %1716 = vmatprep.subr.mxu0 %v2066_v0 }
 0x352   : > { %1717 = vmatpush3.msra.mxu0 %v1235_v61 }
 0x353   : > { %1718 = vmatprep.subr.mxu0 %v2066_v0 }
 0x401   : > { %v974_v34 = vpop.f32.mrf.mxu0 }
 0x402   : > { %v1197_v41 = vsel %vm417_vm1, %v974_v34, 0.0 }
 0x403   : > { %v1696_v35 = vpop.f32.mrf.mxu0 }
 0x405   : > { %v1047_v36 = vpop.f32.mrf.mxu0 }
 0x406   : > { %v1198_v38 = vsel %vm417_vm1, %v1047_v36, 0.0 }
 0x407   : > { %v1701_v37 = vpop.f32.mrf.mxu0  ;;  %v1199_v43 = vadd.f32 %v1198_v38, %v1197_v41 }
 0x409   : > { %v1120_v39 = vpop.f32.mrf.mxu0 }
 0x40a   : > { %v1200_v42 = vsel %vm417_vm1, %v1120_v39, 0.0 }
 0x40b   : > { %v1706_v44 = vpop.f32.mrf.mxu0  ;;  %v1201_v45 = vadd.f32 %v1200_v42, %v1199_v43  ;;  %v408_v42 = vld [vmem:[#allocation8 + $0x8] sm:$0x3] }
 0x40c   : > { %v1419_v43 = vrot.slane %v408_v42, %v415_v16 }
 0x40d   : > { %v1193_v46 = vpop.f32.mrf.mxu0 }
 0x40e   : > { %v1202_v48 = vsel %vm417_vm1, %v1193_v46, 0.0 }
 0x40f   : > { %v1203_v49 = vadd.f32 %v1202_v48, %v1201_v45  ;;  %v1711_v50 = vpop.f32.mrf.mxu0  ;;  %v1424_v45 = vrot.slane %v408_v42, %v497_v17 }
 0x411   : > { %v1208_v51 = vadd.f32 %v1207_v47, %v1203_v49 }
 0x413   : > { %v1209_v52 = vadd.f32 %v1208_v51, %v2338_v9  ;;  %v1234_v9 = vld [vmem:[#allocation7] sm:$0xff] }
 0x414   : > { %1719 = vmatpush3.msra.mxu0 %v1234_v9 }
 0x415   : > { %v1210_v53 = vsel %vm417_vm1, %v1209_v52, 0.0 }
 0x416   : > { %1211 = vadd.xlane.f32.xlu0 %v1210_v53 }
 0x49f   : > { %v1212_v54 = vpop.xlane.xlu0 %1211 }
 0x4a0   : > { %v1214_v55 = vmul.f32 0.03125, %v1212_v54 }
 0x4a2   : > { %v1215_v56 = vsub.f32 %v1209_v52, %v1214_v55 }
 0x4a4   : > { %v1216_v57 = vmul.f32 %v1215_v56, %v1215_v56 }
 0x4a6   : > { %v1217_v58 = vsel %vm417_vm1, %v1216_v57, 0.0 }
 0x4a7   : > { %1218 = vadd.xlane.f32.xlu1 %v1217_v58 }
 0x530   : > { %v1219_v4 = vpop.xlane.xlu1 %1218 }
 0x531   : > { %v1220_v5 = vmul.f32 0.03125, %v1219_v4 }
 0x533   : > { %v1221_v6 = vadd.f32 1e-05, %v1220_v5 }
 0x535   : > { %1849 = vrsqrt.f32 %v1221_v6 }
 0x542   : > { %v1850_v11 = vpop.eup %1849 }
 0x543   : > { %v1223_v12 = vmul.f32 %v1850_v11, %v1215_v56 }
 0x545   : > { %v1228_v14 = vmul.f32 %v1227_v10, %v1223_v12 }
 0x547   : > { %v1233_v19 = vadd.f32 %v1232_v13, %v1228_v14 }
 0x549   : > { %1721 = vmatmul.mubr.msk.f32.vlgmr.msra.gmra.mxu0 %vm417_vm1, %v1233_v19 }
 0x609   : > { %v1311_v25 = vpop.f32.mrf.mxu0 }
 0x60a   : > { %v1312_v26 = vadd.f32 %v1311_v25, %v1241_v24 }
 0x60b   : > { %v1722_v27 = vpop.f32.mrf.mxu0 }
 0x60c   : > { %v1315_v28 = vmax.f32 %v1312_v26, 0.0 }
 0x60e   : > { %1740 = vmatmul.mubr.msk.f32.vlgmr.msra.gmra.mxu1 %vm1328_vm3, %v1315_v28 }
 0x6ce   : > { %v1398_v31 = vpop.f32.mrf.mxu1 }
 0x6cf   : > { %v1399_v32 = vadd.f32 %v1398_v31, %v1327_v30 }
 0x6d0   : > { %v1741_v33 = vpop.f32.mrf.mxu1 }
 0x6d1   : > { %v1402_v34 = vadd.f32 %v1399_v32, %v1233_v19 }
 0x6d3   : > { %v1403_v0 = vsel %vm417_vm1, %v1402_v34, 0.0 }
 0x6d4   : > { %1404 = vadd.xlane.f32.xlu0 %v1403_v0 }
 0x75d   : > { %v1405_v35 = vpop.xlane.xlu0 %1404 }
 0x75e   : > { %v1406_v36 = vmul.f32 0.03125, %v1405_v35 }
 0x760   : > { %v1407_v37 = vsub.f32 %v1402_v34, %v1406_v36 }
 0x762   : > { %v1408_v38 = vmul.f32 %v1407_v37, %v1407_v37 }
 0x764   : > { %v1409_v39 = vsel %vm417_vm1, %v1408_v38, 0.0 }
 0x765   : > { %1410 = vadd.xlane.f32.xlu1 %v1409_v39 }
 0x7ee   : > { %v1411_v40 = vpop.xlane.xlu1 %1410 }
 0x7ef   : > { %v1412_v41 = vmul.f32 0.03125, %v1411_v40 }
 0x7f1   : > { %v1413_v18 = vadd.f32 1e-05, %v1412_v41 }
 0x7f3   : > { %1851 = vrsqrt.f32 %v1413_v18 }
 0x800   : > { %v1852_v44 = vpop.eup %1851 }
 0x801   : > { %v1415_v46 = vmul.f32 %v1852_v44, %v1407_v37 }
 0x803   : > { %v1420_v47 = vmul.f32 %v1419_v43, %v1415_v46 }
 0x805   : > { %v1425_v48 = vadd.f32 %v1424_v45, %v1420_v47 }
 0x807   : > { %1426 = vst.msk [vmem:[%s405_s4] sm:$0xff] %vm417_vm1, %v1425_v48 }
 0x808   : > { %1998 = shalt.err (!%p1995_p11)
}
 0x809   : > { %s1999_s21 = scalar_lea.hbm %s1439_s25, 128  ;;  %s2003_s19 = scalar_lea.hbm %s2525_s9, 256 }
 0x80a   : > { %p2000_p13 = scmp.ne.s32.totalorder %s1439_s25, %s1999_s21  ;;  %p2004_p4 = scmp.lt.s32.totalorder %s1439_s25, %s2525_s9 }
 0x80b   : > { %p2005_p6 = scmp.lt.s32.totalorder %s2003_s19, %s1999_s21 }
 0x80c   : > { %p2001_p1 = pnand %p2000_p13, %p2551_p7 }
 0x80d   : > { %p2006_p5 = por %p2005_p6, %p2004_p4 }
 0x80e   : > { %p2002_p3 = pneg %p2001_p1 }
 0x810   : > { %p2007_p8 = pnand %p2006_p5, %p2002_p3 }
 0x812   : > { %2010 = shalt.err (!%p2007_p8)
}
 0x813   : > { %1760 = dma.vmem_to_hbm [thread:$0]  (%p2551_p7), %s1442_s16, 128, %s1439_s25, %s1428_s27  }
 0x814 PF: > { %s1453_s7 = sand.u32 1, %s2045_s30   ;;  %p2552_p10 = scmp.ne.s32.totalorder %s2543_s17, 0 }
 0x815   : > { %p2553_p0 = scmp.ge.s32.totalorder %s2057_s12, 2  ;;  %s1454_s4 = scalar_lea.sflag [#allocation4], %s1453_s7 }
 0x817   : > { %p1780_p12 = pnand %p2553_p0, %p2552_p10 }
 0x819   : > { %p1781_p2 = pneg %p1780_p12 }
 0x81b   : > { %2040 = dma.done.wait (%p1781_p2), %s1454_s4, 128  }
 0x81c   : > { %2042 = vsyncadd (%p1781_p2), %s1454_s4, 4294967168  ;;  %p24_p9 = scmp.ge.s32.totalorder %s2220_s26, 4   ;;  %s2554_s30 = smov %s2049_s10 }
 0x81d   : > { %s2555_s10 = smov %s2053_s11  ;;  %s2556_s11 = smov %s2231_s29 }
 0x81e   : > { %s2557_s12 = smov %s2220_s26  ;;  %26 = sbr.rel (!%p24_p9) target bundleno = 12 (0xc), region = 117 }
 0x823   :  { %1459 = vsyncpa [#allocation3], 1 }
 0x824   :  { %1461 = vsyncpa [#allocation3 + $0x1], 1 }
 0x825   :  { %1462 = vsyncpa [#allocation6], 1 }
 0x826   :  { %1463 = vsyncpa [#allocation9], 1 }
 0x827   :  { %1464 = vsyncpa [#allocation4], 1 }
 0x828   :  { %1466 = vsyncpa [#allocation4 + $0x1], 1 }

</bundles_post_ra>
